<compile_context>
chip_gen: v7x
topology: tpu7x:2x2x1
jax: 0.10.0
libtpu: 0.0.40
codegen_flags: <defaults>
</compile_context>

<pallas_src>
import numpy as np

import jax
import jax.numpy as jnp
from jax.experimental import pallas as pl
from jax.experimental.pallas import tpu as pltpu


LANE_ALIGN = 256       # fills v6e/v7x 2x256x256 MXU; also a multiple of v5e's 128
SUBLANE_ALIGN = 8


def _round_up(a, m):
    return (a + m - 1) // m * m


def _vmem_budget_bytes():
    """~75% of the per-core VMEM capacity (48 MiB on v7x, 96 MiB on v5e/v6e)."""
    cap = 64 * 1024 * 1024
    try:
        info = pltpu.get_tpu_info()
        cap = int(getattr(info, "vmem_capacity_bytes", cap))
    except Exception:
        pass  # conservative fallback (v7x per-TC VMEM)
    return int(cap * 3 // 4)


# --------------------------------------------------------------------------
# Kernel body: one (i, k) grid point.   grid = (batch tiles, FC K tiles)
#   x*_ref : [tm, S_pad]     bf16   (activations, full projection contraction)
#   w*_ref : [S_pad, tk]     bf16   (projection weights, k-th column tile)
#   fct_ref: [tk, S_pad]     bf16   (fc weight pre-transposed to [in, out])
#   b_ref  : [1,  S_pad]     f32    (fc bias)
#   o_ref  : [tm, S_pad]     out dtype (resident across k: block index (i, 0))
#   scratch: optional [tm, S_pad] f32 accumulator (only for non-f32 outputs)
# --------------------------------------------------------------------------
def _make_kernel(accumulate_into_output):
    def kernel(x1_ref, x2_ref, x3_ref, w1_ref, w2_ref, w3_ref,
               fct_ref, b_ref, o_ref, *scratch):
        acc_ref = o_ref if accumulate_into_output else scratch[0]
        k = pl.program_id(1)
        f32 = jnp.float32

        @pl.when(k == 0)
        def _init():
            acc_ref[...] = jnp.zeros_like(acc_ref)

        # Stage 1: k-th column tile of the fused projection (computed ONCE per
        # (i, k); f32 accumulation on the MXU).
        y = jnp.dot(x1_ref[...], w1_ref[...], preferred_element_type=f32)
        y = y + jnp.dot(x2_ref[...], w2_ref[...], preferred_element_type=f32)
        y = y + jnp.dot(x3_ref[...], w3_ref[...], preferred_element_type=f32)

        # Stage 2: partial FC product against the pre-transposed [in, out]
        # weight tile — plain matmul, no per-step transpose.  Only the MXU
        # operand is narrowed; the accumulator stays f32.
        acc_ref[...] += jnp.dot(y.astype(fct_ref.dtype), fct_ref[...],
                                preferred_element_type=f32)

        # Epilogue: add bias once, on the last K step.
        @pl.when(k == pl.num_programs(1) - 1)
        def _fin():
            if accumulate_into_output:
                o_ref[...] += b_ref[...]
            else:
                o_ref[...] = (acc_ref[...] + b_ref[...]).astype(o_ref.dtype)

    return kernel


# --------------------------------------------------------------------------
# One-time parameter preparation (pad / cast / transpose of the constants).
# --------------------------------------------------------------------------
def prepare_params(w1, w2, w3, fc_weight, fc_bias, *, compute_dtype=jnp.bfloat16):
    S = w1.shape[0]
    S_pad = _round_up(S, LANE_ALIGN)

    def pad2(a):
        return jnp.pad(a.astype(compute_dtype),
                       ((0, S_pad - a.shape[0]), (0, S_pad - a.shape[1])))

    return dict(
        S=S, S_pad=S_pad, compute_dtype=compute_dtype,
        w1=pad2(w1), w2=pad2(w2), w3=pad2(w3),
        # fc weight pre-transposed once to [in, out] — no transpose per call
        # or per grid step.
        fct=pad2(fc_weight.T),
        bias=jnp.pad(fc_bias.astype(jnp.float32).reshape(1, S),
                     ((0, 0), (0, S_pad - S))),
    )


# --------------------------------------------------------------------------
# Wrapper
# --------------------------------------------------------------------------
def feature_fusion(x1, x2, x3, params):
    """Pallas implementation of FeatureFusion.forward.

    x1, x2, x3 : [B, S]
    params     : output of prepare_params()
    returns    : [B, S]  (same dtype as x1)
    """
    B, S = x1.shape
    assert S == params["S"], "input feature size mismatch vs prepared params"
    S_pad = params["S_pad"]
    cdt = params["compute_dtype"]
    out_dtype = x1.dtype
    acc_into_out = (out_dtype == jnp.float32)   # accumulate directly in o_ref

    cbytes = np.dtype(cdt).itemsize
    obytes = np.dtype(out_dtype).itemsize
    budget = _vmem_budget_bytes()

    # ---- tile selection (sized against the per-generation VMEM budget) ----
    tm = min(256, _round_up(B, SUBLANE_ALIGN))
    tk_candidates = [t for t in (512, 256, 128) if S_pad % t == 0] or [S_pad]
    tk_idx = 0
    tk = tk_candidates[tk_idx]

    def footprint(tm_, tk_):
        f = 3 * tm_ * S_pad * cbytes * 2     # x1,x2,x3 blocks (double-buffered)
        f += 3 * S_pad * tk_ * cbytes * 2    # w1,w2,w3 column tiles
        f += tk_ * S_pad * cbytes * 2        # fc^T row tile
        f += S_pad * 4 * 2                   # bias
        f += tm_ * S_pad * obytes * 2        # output block
        if not acc_into_out:
            f += tm_ * S_pad * 4             # f32 accumulator scratch
        return f

    while footprint(tm, tk) > budget:
        if tk_idx + 1 < len(tk_candidates):
            tk_idx += 1
            tk = tk_candidates[tk_idx]
        elif tm > SUBLANE_ALIGN:
            tm = _round_up(max(SUBLANE_ALIGN, tm // 2), SUBLANE_ALIGN)
        else:
            # TODO(synk): for extreme S the collapsed-N layout exceeds VMEM;
            # an N-tiled (i,k,j) grid variant would be needed there.
            break

    B_pad = _round_up(B, tm)
    grid = (B_pad // tm, S_pad // tk)

    def padx(a):
        return jnp.pad(a.astype(cdt), ((0, B_pad - B), (0, S_pad - S)))

    x1p, x2p, x3p = padx(x1), padx(x2), padx(x3)

    kernel = _make_kernel(acc_into_out)
    scratch_shapes = [] if acc_into_out else [pltpu.VMEM((tm, S_pad), jnp.float32)]

    flops = 8 * B * S * S                                   # 3 proj + 1 fc matmuls
    bytes_accessed = (4 * B * S) * obytes + 4 * S * S * cbytes + 4 * S

    out_padded = pl.pallas_call(
        kernel,
        out_shape=jax.ShapeDtypeStruct((B_pad, S_pad), out_dtype),
        grid_spec=pltpu.PrefetchScalarGridSpec(
            num_scalar_prefetch=0,
            grid=grid,
            in_specs=[
                # activations: full projection contraction per batch tile
                pl.BlockSpec((tm, S_pad), lambda i, k: (i, 0)),   # x1
                pl.BlockSpec((tm, S_pad), lambda i, k: (i, 0)),   # x2
                pl.BlockSpec((tm, S_pad), lambda i, k: (i, 0)),   # x3
                # projection weights: k-th column tile (streamed once per i)
                pl.BlockSpec((S_pad, tk), lambda i, k: (0, k)),   # w1
                pl.BlockSpec((S_pad, tk), lambda i, k: (0, k)),   # w2
                pl.BlockSpec((S_pad, tk), lambda i, k: (0, k)),   # w3
                # fc weight, pre-transposed [in, out]: k-th row tile
                pl.BlockSpec((tk, S_pad), lambda i, k: (k, 0)),
                # fc bias
                pl.BlockSpec((1, S_pad), lambda i, k: (0, 0)),
            ],
            out_specs=pl.BlockSpec((tm, S_pad), lambda i, k: (i, 0)),
            scratch_shapes=scratch_shapes,
        ),
        compiler_params=pltpu.CompilerParams(
            dimension_semantics=("parallel", "arbitrary"),
            vmem_limit_bytes=budget,
        ),
        cost_estimate=pl.CostEstimate(flops=flops, transcendentals=0,
                                      bytes_accessed=bytes_accessed),
    )(x1p, x2p, x3p, params["w1"], params["w2"], params["w3"],
      params["fct"], params["bias"])

    return out_padded[:B, :S]


# --------------------------------------------------------------------------
# References
# --------------------------------------------------------------------------
def _reference_f32(x1, x2, x3, w1, w2, w3, fc_w, fc_b):
    y = x1 @ w1 + x2 @ w2 + x3 @ w3
    return y @ fc_w.T + fc_b


def _reference_matched(x1, x2, x3, w1, w2, w3, fc_w, fc_b,
                       compute_dtype=jnp.bfloat16):
    """Emulates the kernel's precision: bf16 MXU operands, f32 accumulation."""
    f32 = jnp.float32
    q = lambda a: a.astype(compute_dtype).astype(f32)
    y = q(x1) @ q(w1) + q(x2) @ q(w2) + q(x3) @ q(w3)   # f32 accumulation
    return q(y) @ q(fc_w).T + fc_b.astype(f32)


if __name__ == "__main__":
    key = jax.random.PRNGKey(0)
    B, S = 8, 32                               # batch=8, size=32 (small, synthetic)
    ks = jax.random.split(key, 8)

    x1 = jax.random.normal(ks[0], (B, S), jnp.float32)
    x2 = jax.random.normal(ks[1], (B, S), jnp.float32)
    x3 = jax.random.normal(ks[2], (B, S), jnp.float32)

    # Parameters (mirror torch.randn / nn.Linear init scales).
    w1 = jax.random.normal(ks[3], (S, S), jnp.float32)
    w2 = jax.random.normal(ks[4], (S, S), jnp.float32)
    w3 = jax.random.normal(ks[5], (S, S), jnp.float32)
    fc_weight = jax.random.normal(ks[6], (S, S), jnp.float32) * (1.0 / jnp.sqrt(S))
    fc_bias = jax.random.normal(ks[7], (S,), jnp.float32) * (1.0 / jnp.sqrt(S))

    params = prepare_params(w1, w2, w3, fc_weight, fc_bias)   # one-time prep

    out = feature_fusion(x1, x2, x3, params)
    out = jax.block_until_ready(out)
    assert out.shape == (B, S)

    # Tight check against a precision-matched (bf16-operand, f32-acc) reference.
    ref_m = _reference_matched(x1, x2, x3, w1, w2, w3, fc_weight, fc_bias)
    assert jnp.allclose(out, ref_m, atol=1e-2, rtol=1e-2), \
        "mismatch vs precision-matched reference"

    # Loose sanity check against the pure-f32 module semantics.
    ref_f = _reference_f32(x1, x2, x3, w1, w2, w3, fc_weight, fc_bias)
    assert jnp.allclose(out, ref_f, atol=0.5, rtol=0.1), \
        "mismatch vs f32 reference (beyond bf16 tolerance)"

    print("KERNEL_OK")
</pallas_src>

<mosaic_0001>
module attributes {stable_mosaic.version = 11 : i64} {
  func.func @kernel(%arg0: i32, %arg1: i32, %arg2: memref<8x256xbf16, #tpu.memory_space<vmem>>, %arg3: memref<8x256xbf16, #tpu.memory_space<vmem>>, %arg4: memref<8x256xbf16, #tpu.memory_space<vmem>>, %arg5: memref<256x256xbf16, #tpu.memory_space<vmem>>, %arg6: memref<256x256xbf16, #tpu.memory_space<vmem>>, %arg7: memref<256x256xbf16, #tpu.memory_space<vmem>>, %arg8: memref<256x256xbf16, #tpu.memory_space<vmem>>, %arg9: memref<1x256xf32, #tpu.memory_space<vmem>>, %arg10: memref<8x256xf32, #tpu.memory_space<vmem>>) attributes {dimension_semantics = [#tpu.dimension_semantics<parallel>, #tpu.dimension_semantics<arbitrary>], iteration_bounds = array<i64: 1, 1>, scalar_prefetch = 0 : i64, scratch_operands = 0 : i64, tpu.core_type = #tpu.core_type<tc>, window_params = [{transform_indices = @transform_0, window_bounds = array<i64: 8, 256>}, {transform_indices = @transform_1, window_bounds = array<i64: 8, 256>}, {transform_indices = @transform_2, window_bounds = array<i64: 8, 256>}, {transform_indices = @transform_3, window_bounds = array<i64: 256, 256>}, {transform_indices = @transform_4, window_bounds = array<i64: 256, 256>}, {transform_indices = @transform_5, window_bounds = array<i64: 256, 256>}, {transform_indices = @transform_6, window_bounds = array<i64: 256, 256>}, {pipeline_mode = #tpu.pipeline_mode<synchronous>, transform_indices = @transform_7, window_bounds = array<i64: 1, 256>}, {transform_indices = @transform_8, window_bounds = array<i64: 8, 256>}]} {
    %c0_i32 = arith.constant 0 : i32
    %0 = arith.cmpi eq, %arg1, %c0_i32 : i32
    %1 = arith.extui %0 : i1 to i32
    %c0_i32_0 = arith.constant 0 : i32
    %2 = arith.cmpi ne, %1, %c0_i32_0 : i32
    scf.if %2 {
      %cst_23 = arith.constant 0.000000e+00 : f32
      %23 = vector.broadcast %cst_23 : f32 to vector<8x256xf32>
      %c0_24 = arith.constant 0 : index
      %c0_25 = arith.constant 0 : index
      %24 = vector.load %arg10[%c0_24, %c0_25] : memref<8x256xf32, #tpu.memory_space<vmem>>, vector<8x256xf32>
      tpu.vector_store %arg10[%c0_24, %c0_25], %23 {strides = array<i32>} : memref<8x256xf32, #tpu.memory_space<vmem>>, vector<8x256xf32>,
    } else {
    }
    %c0 = arith.constant 0 : index
    %c0_1 = arith.constant 0 : index
    %3 = vector.load %arg2[%c0, %c0_1] : memref<8x256xbf16, #tpu.memory_space<vmem>>, vector<8x256xbf16>
    %c0_2 = arith.constant 0 : index
    %c0_3 = arith.constant 0 : index
    %4 = vector.load %arg5[%c0_2, %c0_3] : memref<256x256xbf16, #tpu.memory_space<vmem>>, vector<256x256xbf16>
    %cst = arith.constant dense<0.000000e+00> : vector<8x256xf32>
    %5 = tpu.matmul %3, %4, %cst {dimension_numbers = #tpu.dot_dimension_numbers<[1], [0], [0], [1], [0, 0, 1, 1], [], []>} : vector<8x256xbf16>, vector<256x256xbf16>, vector<8x256xf32> -> vector<8x256xf32>
    %c0_4 = arith.constant 0 : index
    %c0_5 = arith.constant 0 : index
    %6 = vector.load %arg3[%c0_4, %c0_5] : memref<8x256xbf16, #tpu.memory_space<vmem>>, vector<8x256xbf16>
    %c0_6 = arith.constant 0 : index
    %c0_7 = arith.constant 0 : index
    %7 = vector.load %arg6[%c0_6, %c0_7] : memref<256x256xbf16, #tpu.memory_space<vmem>>, vector<256x256xbf16>
    %cst_8 = arith.constant dense<0.000000e+00> : vector<8x256xf32>
    %8 = tpu.matmul %6, %7, %cst_8 {dimension_numbers = #tpu.dot_dimension_numbers<[1], [0], [0], [1], [0, 0, 1, 1], [], []>} : vector<8x256xbf16>, vector<256x256xbf16>, vector<8x256xf32> -> vector<8x256xf32>
    %9 = arith.addf %5, %8 : vector<8x256xf32>
    %c0_9 = arith.constant 0 : index
    %c0_10 = arith.constant 0 : index
    %10 = vector.load %arg4[%c0_9, %c0_10] : memref<8x256xbf16, #tpu.memory_space<vmem>>, vector<8x256xbf16>
    %c0_11 = arith.constant 0 : index
    %c0_12 = arith.constant 0 : index
    %11 = vector.load %arg7[%c0_11, %c0_12] : memref<256x256xbf16, #tpu.memory_space<vmem>>, vector<256x256xbf16>
    %cst_13 = arith.constant dense<0.000000e+00> : vector<8x256xf32>
    %12 = tpu.matmul %10, %11, %cst_13 {dimension_numbers = #tpu.dot_dimension_numbers<[1], [0], [0], [1], [0, 0, 1, 1], [], []>} : vector<8x256xbf16>, vector<256x256xbf16>, vector<8x256xf32> -> vector<8x256xf32>
    %13 = arith.addf %9, %12 : vector<8x256xf32>
    %c0_14 = arith.constant 0 : index
    %c0_15 = arith.constant 0 : index
    %14 = vector.load %arg10[%c0_14, %c0_15] : memref<8x256xf32, #tpu.memory_space<vmem>>, vector<8x256xf32>
    %15 = arith.truncf %13 : vector<8x256xf32> to vector<8x256xbf16>
    %c0_16 = arith.constant 0 : index
    %c0_17 = arith.constant 0 : index
    %16 = vector.load %arg8[%c0_16, %c0_17] : memref<256x256xbf16, #tpu.memory_space<vmem>>, vector<256x256xbf16>
    %cst_18 = arith.constant dense<0.000000e+00> : vector<8x256xf32>
    %17 = tpu.matmul %15, %16, %cst_18 {dimension_numbers = #tpu.dot_dimension_numbers<[1], [0], [0], [1], [0, 0, 1, 1], [], []>} : vector<8x256xbf16>, vector<256x256xbf16>, vector<8x256xf32> -> vector<8x256xf32>
    %18 = arith.addf %14, %17 : vector<8x256xf32>
    %c0_19 = arith.constant 0 : index
    %c0_20 = arith.constant 0 : index
    %19 = vector.load %arg10[%c0_19, %c0_20] : memref<8x256xf32, #tpu.memory_space<vmem>>, vector<8x256xf32>
    tpu.vector_store %arg10[%c0_19, %c0_20], %18 {strides = array<i32>} : memref<8x256xf32, #tpu.memory_space<vmem>>, vector<8x256xf32>,
    %c0_i32_21 = arith.constant 0 : i32
    %20 = arith.cmpi eq, %arg1, %c0_i32_21 : i32
    %21 = arith.extui %20 : i1 to i32
    %c0_i32_22 = arith.constant 0 : i32
    %22 = arith.cmpi ne, %21, %c0_i32_22 : i32
    scf.if %22 {
      %c0_23 = arith.constant 0 : index
      %c0_24 = arith.constant 0 : index
      %23 = vector.load %arg10[%c0_23, %c0_24] : memref<8x256xf32, #tpu.memory_space<vmem>>, vector<8x256xf32>
      %c0_25 = arith.constant 0 : index
      %c0_26 = arith.constant 0 : index
      %24 = vector.load %arg9[%c0_25, %c0_26] : memref<1x256xf32, #tpu.memory_space<vmem>>, vector<1x256xf32>
      %25 = vector.broadcast %24 : vector<1x256xf32> to vector<8x256xf32>
      %26 = arith.addf %23, %25 : vector<8x256xf32>
      %c0_27 = arith.constant 0 : index
      %c0_28 = arith.constant 0 : index
      %27 = vector.load %arg10[%c0_27, %c0_28] : memref<8x256xf32, #tpu.memory_space<vmem>>, vector<8x256xf32>
      tpu.vector_store %arg10[%c0_27, %c0_28], %26 {strides = array<i32>} : memref<8x256xf32, #tpu.memory_space<vmem>>, vector<8x256xf32>,
    } else {
    }
    return
  }
  func.func @transform_0(%arg0: i32, %arg1: i32) -> (i32, i32) {
    %c0_i32 = arith.constant 0 : i32
    %c0_i32_0 = arith.constant 0 : i32
    return %arg0, %c0_i32 : i32, i32
  }
  func.func @transform_1(%arg0: i32, %arg1: i32) -> (i32, i32) {
    %c0_i32 = arith.constant 0 : i32
    %c0_i32_0 = arith.constant 0 : i32
    return %arg0, %c0_i32 : i32, i32
  }
  func.func @transform_2(%arg0: i32, %arg1: i32) -> (i32, i32) {
    %c0_i32 = arith.constant 0 : i32
    %c0_i32_0 = arith.constant 0 : i32
    return %arg0, %c0_i32 : i32, i32
  }
  func.func @transform_3(%arg0: i32, %arg1: i32) -> (i32, i32) {
    %c0_i32 = arith.constant 0 : i32
    %c0_i32_0 = arith.constant 0 : i32
    return %c0_i32, %arg1 : i32, i32
  }
  func.func @transform_4(%arg0: i32, %arg1: i32) -> (i32, i32) {
    %c0_i32 = arith.constant 0 : i32
    %c0_i32_0 = arith.constant 0 : i32
    return %c0_i32, %arg1 : i32, i32
  }
  func.func @transform_5(%arg0: i32, %arg1: i32) -> (i32, i32) {
    %c0_i32 = arith.constant 0 : i32
    %c0_i32_0 = arith.constant 0 : i32
    return %c0_i32, %arg1 : i32, i32
  }
  func.func @transform_6(%arg0: i32, %arg1: i32) -> (i32, i32) {
    %c0_i32 = arith.constant 0 : i32
    %c0_i32_0 = arith.constant 0 : i32
    return %arg1, %c0_i32 : i32, i32
  }
  func.func @transform_7(%arg0: i32, %arg1: i32) -> (i32, i32) {
    %c0_i32 = arith.constant 0 : i32
    %c0_i32_0 = arith.constant 0 : i32
    %c0_i32_1 = arith.constant 0 : i32
    return %c0_i32, %c0_i32_0 : i32, i32
  }
  func.func @transform_8(%arg0: i32, %arg1: i32) -> (i32, i32) {
    %c0_i32 = arith.constant 0 : i32
    %c0_i32_0 = arith.constant 0 : i32
    return %arg0, %c0_i32 : i32, i32
  }
}

</mosaic_0001>

<bundles_post_ra>
// kernel: tpu_custom_call.1
= control target key start
LH: loop header
LB: loop body
LE: loop exit
PB: predicated region body
PF: predicated region fallthrough
CT: control target
= control target key end

     0   :  { %13 = vsyncpa [#allocation3], 0  ;;  %s1857_s0 = inlined_call_operand.hbm [shape: bf16[8,256], index: 0, kind: input, shape index: {}]   ;;  %s1858_s1 = inlined_call_operand.hbm [shape: bf16[8,256], index: 1, kind: input, shape index: {}]   ;;  %s1859_s2 = inlined_call_operand.hbm [shape: bf16[8,256], index: 2, kind: input, shape index: {}]   ;;  %s1860_s3 = inlined_call_operand.hbm [shape: bf16[256,256], index: 3, kind: input, shape index: {}]   ;;  %s1861_s4 = inlined_call_operand.hbm [shape: bf16[256,256], index: 4, kind: input, shape index: {}]   ;;  %s1862_s5 = inlined_call_operand.hbm [shape: bf16[256,256], index: 5, kind: input, shape index: {}]   ;;  %s1863_s6 = inlined_call_operand.hbm [shape: bf16[256,256], index: 6, kind: input, shape index: {}]   ;;  %s1864_s7 = inlined_call_operand.vmem [shape: f32[1,256], index: 7, kind: input, shape index: {}]   ;;  %s1865_s8 = inlined_call_operand.hbm [shape: f32[8,256], index: 8, kind: output, shape index: {}]  }
   0x1   :  { %14 = vsyncpa [#allocation6], 0 }
   0x2   :  { %15 = vsyncpa [#allocation9], 0 }
   0x3   :  { %16 = vsyncpa [#allocation12], 0 }
   0x4   :  { %17 = vsyncpa [#allocation4], 0  ;;  %s1665_s27 = smov [#allocation5]   ;;  %s1666_s29 = smov [#allocation8]  }
   0x5   :  { %s34_s28 = sshll.u32 %s1665_s27, 4  ;;  %s53_s30 = sshll.u32 %s1666_s29, 4  ;;  %s35_s28 = int_to_ptr.vmem [resolvable:$true] %s34_s28  ;;  %s1720_s30 = int_to_ptr.vmem [resolvable:$true] %s53_s30 }
   0x6   :  { %s1479_s11 = scalar_lea.hbm %s1858_s1, 128 }
   0x7   :  { %p1480_p0 = scmp.ne.s32.totalorder %s1858_s1, %s1479_s11  ;;  %p1483_p1 = scmp.lt.u32.totalorder %s1479_s11, %s1858_s1 }
   0x9   :  { %p1485_p2 = pnand %p1483_p1, %p1480_p0 }
   0xb   :  { %1488 = shalt.err (!%p1485_p2)
}
   0xc   :  { %s1489_s16 = scalar_lea.vmem %s35_s28, 128  ;;  %p1494_p4 = scmp.lt.s32.totalorder %s35_s28, %s35_s28 }
   0xd   :  { %p1490_p3 = scmp.ne.s32.totalorder %s35_s28, %s1489_s16  ;;  %p1495_p5 = scmp.lt.s32.totalorder %s1489_s16, %s1489_s16 }
   0xf   :  { %p1496_p6 = por %p1495_p5, %p1494_p4 }
  0x11   :  { %p1497_p7 = pnand %p1496_p6, %p1490_p3 }
  0x13   :  { %1500 = shalt.err (!%p1497_p7)
}
  0x14   :  { %37 = dma.hbm_to_vmem [thread:$0]  %s1858_s1, 128, %s35_s28, [#allocation6]  }
  0x15   :  { %s1501_s21 = scalar_lea.hbm %s1860_s3, 4096 }
  0x16   :  { %p1502_p8 = scmp.ne.s32.totalorder %s1860_s3, %s1501_s21  ;;  %p1505_p9 = scmp.lt.u32.totalorder %s1501_s21, %s1860_s3 }
  0x18   :  { %p1507_p10 = pnand %p1505_p9, %p1502_p8 }
  0x1a   :  { %1510 = shalt.err (!%p1507_p10)
}
  0x1b   :  { %s1511_s26 = scalar_lea.vmem %s1720_s30, 4096  ;;  %p1516_p12 = scmp.lt.s32.totalorder %s1720_s30, %s1720_s30 }
  0x1c   :  { %p1512_p11 = scmp.ne.s32.totalorder %s1720_s30, %s1511_s26  ;;  %p1517_p13 = scmp.lt.s32.totalorder %s1511_s26, %s1511_s26 }
  0x1e   :  { %p1518_p0 = por %p1517_p13, %p1516_p12 }
  0x20   :  { %p1519_p1 = pnand %p1518_p0, %p1512_p11 }
  0x22   :  { %1522 = shalt.err (!%p1519_p1)
}
  0x23   :  { %s1667_s1 = smov 128   ;;  %s1668_s27 = smov 8  }
  0x24   :  { %59 = dma.hbm_to_vmem [thread:$0]  %s1860_s3, 4096, %s1720_s30, [#allocation9], %s1667_s1, %s1667_s1, %s1668_s27  }
  0x25   :  { %s1669_s9 = smov [#allocation11]   ;;  %s1670_s11 = smov [#allocation2]  }
  0x26   :  { %s77_s10 = sshll.u32 %s1669_s9, 4  ;;  %s24_s12 = sshll.u32 %s1670_s11, 4  ;;  %s78_s10 = int_to_ptr.vmem [resolvable:$true] %s77_s10  ;;  %s25_s12 = int_to_ptr.vmem [resolvable:$true] %s24_s12 }
  0x27   :  { %s1523_s15 = scalar_lea.hbm %s1862_s5, 4096 }
  0x28   :  { %p1524_p2 = scmp.ne.s32.totalorder %s1862_s5, %s1523_s15  ;;  %p1527_p3 = scmp.lt.u32.totalorder %s1523_s15, %s1862_s5 }
  0x2a   :  { %p1529_p4 = pnand %p1527_p3, %p1524_p2 }
  0x2c   :  { %1532 = shalt.err (!%p1529_p4)
}
  0x2d   :  { %s1533_s3 = scalar_lea.vmem %s78_s10, 4096  ;;  %p1538_p6 = scmp.lt.s32.totalorder %s78_s10, %s78_s10 }
  0x2e   :  { %p1534_p5 = scmp.ne.s32.totalorder %s78_s10, %s1533_s3  ;;  %p1539_p7 = scmp.lt.s32.totalorder %s1533_s3, %s1533_s3 }
  0x30   :  { %p1540_p8 = por %p1539_p7, %p1538_p6 }
  0x32   :  { %p1541_p9 = pnand %p1540_p8, %p1534_p5 }
  0x34   :  { %1544 = shalt.err (!%p1541_p9)
}
  0x35   :  { %83 = dma.hbm_to_vmem [thread:$0]  %s1862_s5, 4096, %s78_s10, [#allocation12], %s1667_s1, %s1667_s1, %s1668_s27  }
  0x36   :  { %s1545_s23 = scalar_lea.hbm %s1857_s0, 128 }
  0x37   :  { %p1546_p10 = scmp.ne.s32.totalorder %s1857_s0, %s1545_s23  ;;  %p1549_p11 = scmp.lt.u32.totalorder %s1545_s23, %s1857_s0 }
  0x39   :  { %p1551_p12 = pnand %p1549_p11, %p1546_p10 }
  0x3b   :  { %1554 = shalt.err (!%p1551_p12)
}
  0x3c   :  { %s1555_s29 = scalar_lea.vmem %s25_s12, 128  ;;  %p1560_p0 = scmp.lt.s32.totalorder %s25_s12, %s25_s12 }
  0x3d   :  { %p1556_p13 = scmp.ne.s32.totalorder %s25_s12, %s1555_s29  ;;  %p1561_p1 = scmp.lt.s32.totalorder %s1555_s29, %s1555_s29 }
  0x3f   :  { %p1562_p2 = por %p1561_p1, %p1560_p0 }
  0x41   :  { %p1563_p3 = pnand %p1562_p2, %p1556_p13 }
  0x43   :  { %1566 = shalt.err (!%p1563_p3)
}
  0x44   :  { %27 = dma.hbm_to_vmem [thread:$0]  %s1857_s0, 128, %s25_s12, [#allocation3]  }
  0x45   :  { %s1671_s10 = smov [#allocation7]   ;;  %s1672_s13 = smov [#allocation10]  }
  0x46   :  { %s44_s11 = sshll.u32 %s1671_s10, 4  ;;  %s65_s14 = sshll.u32 %s1672_s13, 4  ;;  %s45_s11 = int_to_ptr.vmem [resolvable:$true] %s44_s11  ;;  %s1781_s14 = int_to_ptr.vmem [resolvable:$true] %s65_s14 }
  0x47   :  { %s1567_s17 = scalar_lea.hbm %s1859_s2, 128 }
  0x48   :  { %p1568_p4 = scmp.ne.s32.totalorder %s1859_s2, %s1567_s17  ;;  %p1571_p5 = scmp.lt.u32.totalorder %s1567_s17, %s1859_s2 }
  0x4a   :  { %p1573_p6 = pnand %p1571_p5, %p1568_p4 }
  0x4c   :  { %1576 = shalt.err (!%p1573_p6)
}
  0x4d   :  { %s1577_s0 = scalar_lea.vmem %s45_s11, 128  ;;  %p1582_p8 = scmp.lt.s32.totalorder %s45_s11, %s45_s11 }
  0x4e   :  { %p1578_p7 = scmp.ne.s32.totalorder %s45_s11, %s1577_s0  ;;  %p1583_p9 = scmp.lt.s32.totalorder %s1577_s0, %s1577_s0 }
  0x50   :  { %p1584_p10 = por %p1583_p9, %p1582_p8 }
  0x52   :  { %p1585_p11 = pnand %p1584_p10, %p1578_p7 }
  0x54   :  { %1588 = shalt.err (!%p1585_p11)
}
  0x55   :  { %47 = dma.hbm_to_vmem [thread:$0]  %s1859_s2, 128, %s45_s11, [#allocation6]  }
  0x56   :  { %s1589_s23 = scalar_lea.hbm %s1861_s4, 4096 }
  0x57   :  { %p1590_p12 = scmp.ne.s32.totalorder %s1861_s4, %s1589_s23  ;;  %p1593_p13 = scmp.lt.u32.totalorder %s1589_s23, %s1861_s4 }
  0x59   :  { %p1595_p0 = pnand %p1593_p13, %p1590_p12 }
  0x5b   :  { %1598 = shalt.err (!%p1595_p0)
}
  0x5c   :  { %s1599_s29 = scalar_lea.vmem %s1781_s14, 4096  ;;  %p1604_p2 = scmp.lt.s32.totalorder %s1781_s14, %s1781_s14 }
  0x5d   :  { %p1600_p1 = scmp.ne.s32.totalorder %s1781_s14, %s1599_s29  ;;  %p1605_p3 = scmp.lt.s32.totalorder %s1599_s29, %s1599_s29 }
  0x5f   :  { %p1606_p4 = por %p1605_p3, %p1604_p2 }
  0x61   :  { %p1607_p5 = pnand %p1606_p4, %p1600_p1 }
  0x63   :  { %1610 = shalt.err (!%p1607_p5)
}
  0x64   :  { %71 = dma.hbm_to_vmem [thread:$0]  %s1861_s4, 4096, %s1781_s14, [#allocation9], %s1667_s1, %s1667_s1, %s1668_s27  }
  0x65   :  { %s1673_s9 = smov [#allocation13]   ;;  %s1611_s15 = scalar_lea.hbm %s1863_s6, 4096 }
  0x66   :  { %s89_s10 = sshll.u32 %s1673_s9, 4  ;;  %p1612_p6 = scmp.ne.s32.totalorder %s1863_s6, %s1611_s15  ;;  %s90_s10 = int_to_ptr.vmem [resolvable:$true] %s89_s10 }
  0x67   :  { %p1615_p7 = scmp.lt.u32.totalorder %s1611_s15, %s1863_s6 }
  0x69   :  { %p1617_p8 = pnand %p1615_p7, %p1612_p6 }
  0x6b   :  { %1620 = shalt.err (!%p1617_p8)
}
  0x6c   :  { %s1621_s3 = scalar_lea.vmem %s90_s10, 4096  ;;  %p1626_p10 = scmp.lt.s32.totalorder %s90_s10, %s90_s10 }
  0x6d   :  { %p1622_p9 = scmp.ne.s32.totalorder %s90_s10, %s1621_s3  ;;  %p1627_p11 = scmp.lt.s32.totalorder %s1621_s3, %s1621_s3 }
  0x6f   :  { %p1628_p12 = por %p1627_p11, %p1626_p10 }
  0x71   :  { %p1629_p13 = pnand %p1628_p12, %p1622_p9 }
  0x73   :  { %1632 = shalt.err (!%p1629_p13)
}
  0x74   :  { %95 = dma.hbm_to_vmem [thread:$0]  %s1863_s6, 4096, %s90_s10, [#allocation12], %s1667_s1, %s1667_s1, %s1668_s27  }
  0x75   :  { %1655 = dma.done.wait [#allocation3], 128  }
  0x76   :  { %1656 = vsyncadd [#allocation3], 4294967168 }
  0x77   :  { %1657 = dma.done.wait [#allocation6], 256  }
  0x78   :  { %1658 = vsyncadd [#allocation6], 4294967040 }
  0x79   :  { %1659 = dma.done.wait [#allocation9], 8192  }
  0x7a   :  { %1660 = vsyncadd [#allocation9], 4294959104 }
  0x7b   :  { %1661 = dma.done.wait [#allocation12], 8192  }
  0x7c   :  { %1662 = vsyncadd [#allocation12], 4294959104  ;;  %v1281_v0 = vld [vmem:[#allocation8 + $0x4] ss:$8 sps:$4 sm:$0xff]   ;;  %v1283_v1 = vld [vmem:[#allocation8] ss:$8 sps:$4 sm:$0xff]  }
  0x7d   :  { %566 = vmatprep.subr.bf16.mxu0 %v1281_v0  ;;  %v1284_v2 = vld [vmem:[#allocation8 + $0x14] ss:$8 sps:$4 sm:$0xff]   ;;  %v1286_v3 = vld [vmem:[#allocation8 + $0x10] ss:$8 sps:$4 sm:$0xff]   ;;  %v1287_v4 = vld [vmem:[#allocation8 + $0x24] ss:$8 sps:$4 sm:$0xff]  }
  0x7e   :  { %567 = vmatpush1.bf16.msra.mxu0 %v1283_v1  ;;  %v1289_v5 = vld [vmem:[#allocation8 + $0x20] ss:$8 sps:$4 sm:$0xff]   ;;  %v1290_v6 = vld [vmem:[#allocation8 + $0x34] ss:$8 sps:$4 sm:$0xff]   ;;  %v1292_v7 = vld [vmem:[#allocation8 + $0x30] ss:$8 sps:$4 sm:$0xff]  }
  0x7f   :  { %568 = vmatprep.subr.bf16.mxu0 %v1284_v2  ;;  %v1293_v8 = vld [vmem:[#allocation8 + $0x44] ss:$8 sps:$4 sm:$0xff]   ;;  %v1295_v9 = vld [vmem:[#allocation8 + $0x40] ss:$8 sps:$4 sm:$0xff]   ;;  %v1296_v10 = vld [vmem:[#allocation8 + $0x54] ss:$8 sps:$4 sm:$0xff]  }
  0x80   :  { %v1298_v11 = vld [vmem:[#allocation8 + $0x50] ss:$8 sps:$4 sm:$0xff]   ;;  %v1299_v12 = vld [vmem:[#allocation8 + $0x64] ss:$8 sps:$4 sm:$0xff]   ;;  %v1331_v14 = vld [vmem:[#allocation10] ss:$8 sps:$4 sm:$0xff]  }
  0x81   :  { %v1328_v13 = vld [vmem:[#allocation10 + $0x4] ss:$8 sps:$4 sm:$0xff]   ;;  %v1301_v16 = vld [vmem:[#allocation8 + $0x60] ss:$8 sps:$4 sm:$0xff]   ;;  %v1302_v18 = vld [vmem:[#allocation8 + $0x74] ss:$8 sps:$4 sm:$0xff]  }
  0x82   :  { %569 = vmatpush1.bf16.msra.mxu0 %v1286_v3  ;;  %v1830_v15 = vld [vmem:[#allocation2] sm:$0xff]  ;;  %358 = vmatprep.subr.bf16.mxu1 %v1328_v13  ;;  %v1337_v19 = vld [vmem:[#allocation10 + $0x14] ss:$8 sps:$4 sm:$0xff]   ;;  %v1339_v20 = vld [vmem:[#allocation10 + $0x10] ss:$8 sps:$4 sm:$0xff]   ;;  %s1674_s27 = smov [#allocation14]  }
  0x83   :  { %570 = vmatprep.subr.bf16.mxu0 %v1287_v4  ;;  %v1165_v17 = vcombine.high %v1830_v15, %v1830_v15  ;;  %359 = vmatpush1.bf16.msra.mxu1 %v1331_v14  ;;  %v1304_v21 = vld [vmem:[#allocation8 + $0x70] ss:$8 sps:$4 sm:$0xff]   ;;  %v1305_v22 = vld [vmem:[#allocation8 + $0x84] ss:$8 sps:$4 sm:$0xff]   ;;  %v1345_v24 = vld [vmem:[#allocation10 + $0x20] ss:$8 sps:$4 sm:$0xff]   ;;  %v1164_v58 = vcombine.low %v1830_v15, %v1830_v15 }
  0x84   :  { %360 = vmatprep.subr.bf16.mxu1 %v1337_v19  ;;  %v1343_v23 = vld [vmem:[#allocation10 + $0x24] ss:$8 sps:$4 sm:$0xff]   ;;  %v1307_v25 = vld [vmem:[#allocation8 + $0x80] ss:$8 sps:$4 sm:$0xff]   ;;  %v1349_v26 = vld [vmem:[#allocation10 + $0x34] ss:$8 sps:$4 sm:$0xff]  }
  0x85   :  { %598 = vmatprep.mubr.bf16.mxu0 %v1165_v17  ;;  %v1308_v27 = vld [vmem:[#allocation8 + $0x94] ss:$8 sps:$4 sm:$0xff]   ;;  %v1351_v28 = vld [vmem:[#allocation10 + $0x30] ss:$8 sps:$4 sm:$0xff]   ;;  %v1355_v29 = vld [vmem:[#allocation10 + $0x44] ss:$8 sps:$4 sm:$0xff]  }
  0x86   :  { %571 = vmatpush1.bf16.msra.mxu0 %v1289_v5  ;;  %v1310_v30 = vld [vmem:[#allocation8 + $0x90] ss:$8 sps:$4 sm:$0xff]   ;;  %v1311_v31 = vld [vmem:[#allocation8 + $0xa4] ss:$8 sps:$4 sm:$0xff]   ;;  %v1357_v32 = vld [vmem:[#allocation10 + $0x40] ss:$8 sps:$4 sm:$0xff]  }
  0x87   :  { %572 = vmatprep.subr.bf16.mxu0 %v1290_v6  ;;  %361 = vmatpush1.bf16.msra.mxu1 %v1339_v20  ;;  %v1361_v33 = vld [vmem:[#allocation10 + $0x54] ss:$8 sps:$4 sm:$0xff]   ;;  %v1313_v34 = vld [vmem:[#allocation8 + $0xa0] ss:$8 sps:$4 sm:$0xff]   ;;  %v1363_v36 = vld [vmem:[#allocation10 + $0x50] ss:$8 sps:$4 sm:$0xff]  }
  0x88   :  { %362 = vmatprep.subr.bf16.mxu1 %v1343_v23  ;;  %v1314_v35 = vld [vmem:[#allocation8 + $0xb4] ss:$8 sps:$4 sm:$0xff]   ;;  %v1367_v37 = vld [vmem:[#allocation10 + $0x64] ss:$8 sps:$4 sm:$0xff]   ;;  %v1316_v38 = vld [vmem:[#allocation8 + $0xb0] ss:$8 sps:$4 sm:$0xff]  }
  0x89   :  { %v1317_v39 = vld [vmem:[#allocation8 + $0xc4] ss:$8 sps:$4 sm:$0xff]   ;;  %v1369_v40 = vld [vmem:[#allocation10 + $0x60] ss:$8 sps:$4 sm:$0xff]   ;;  %v1373_v41 = vld [vmem:[#allocation10 + $0x74] ss:$8 sps:$4 sm:$0xff]  }
  0x8a   :  { %573 = vmatpush1.bf16.msra.mxu0 %v1292_v7  ;;  %v1319_v42 = vld [vmem:[#allocation8 + $0xc0] ss:$8 sps:$4 sm:$0xff]   ;;  %v1320_v43 = vld [vmem:[#allocation8 + $0xd4] ss:$8 sps:$4 sm:$0xff]   ;;  %v1375_v44 = vld [vmem:[#allocation10 + $0x70] ss:$8 sps:$4 sm:$0xff]  }
  0x8b   :  { %574 = vmatprep.subr.bf16.mxu0 %v1293_v8  ;;  %363 = vmatpush1.bf16.msra.mxu1 %v1345_v24  ;;  %v1379_v45 = vld [vmem:[#allocation10 + $0x84] ss:$8 sps:$4 sm:$0xff]   ;;  %v1322_v46 = vld [vmem:[#allocation8 + $0xd0] ss:$8 sps:$4 sm:$0xff]   ;;  %v1381_v48 = vld [vmem:[#allocation10 + $0x80] ss:$8 sps:$4 sm:$0xff]  }
  0x8c   :  { %364 = vmatprep.subr.bf16.mxu1 %v1349_v26  ;;  %v1323_v47 = vld [vmem:[#allocation8 + $0xe4] ss:$8 sps:$4 sm:$0xff]   ;;  %v1385_v49 = vld [vmem:[#allocation10 + $0x94] ss:$8 sps:$4 sm:$0xff]   ;;  %v1325_v50 = vld [vmem:[#allocation8 + $0xe0] ss:$8 sps:$4 sm:$0xff]  }
  0x8d   :  { %v1326_v51 = vld [vmem:[#allocation8 + $0xf4] ss:$8 sps:$4 sm:$0xff]   ;;  %v1387_v52 = vld [vmem:[#allocation10 + $0x90] ss:$8 sps:$4 sm:$0xff]   ;;  %v1391_v53 = vld [vmem:[#allocation10 + $0xa4] ss:$8 sps:$4 sm:$0xff]  }
  0x8e   :  { %575 = vmatpush1.bf16.msra.mxu0 %v1295_v9  ;;  %v1330_v54 = vld [vmem:[#allocation8 + $0xf0] ss:$8 sps:$4 sm:$0xff]   ;;  %v1336_v55 = vld [vmem:[#allocation11 + $0x4] ss:$8 sps:$4 sm:$0xff]   ;;  %v1393_v56 = vld [vmem:[#allocation10 + $0xa0] ss:$8 sps:$4 sm:$0xff]  }
  0x8f   :  { %576 = vmatprep.subr.bf16.mxu0 %v1296_v10  ;;  %365 = vmatpush1.bf16.msra.mxu1 %v1351_v28  ;;  %v1397_v57 = vld [vmem:[#allocation10 + $0xb4] ss:$8 sps:$4 sm:$0xff]   ;;  %v1334_v59 = vld [vmem:[#allocation11] ss:$8 sps:$4 sm:$0xff]   ;;  %v1399_v62 = vld [vmem:[#allocation10 + $0xb0] ss:$8 sps:$4 sm:$0xff]  }
  0x90   :  { %366 = vmatprep.subr.bf16.mxu1 %v1355_v29  ;;  %v158_v60 = vld [vmem:[#allocation5] sm:$0xff]  ;;  %v1836_v0 = vld [vmem:[#allocation7] sm:$0xff]  ;;  %v1403_v1 = vld [vmem:[#allocation10 + $0xc4] ss:$8 sps:$4 sm:$0xff]   ;;  %s1118_s30 = sshll.u32 %s1674_s27, 4  ;;  %s1119_s30 = int_to_ptr.vmem [resolvable:$true] %s1118_s30 }
  0x91   :  { %v1342_v61 = vld [vmem:[#allocation11 + $0x14] ss:$8 sps:$4 sm:$0xff]   ;;  %v1131_v63 = vcombine.high %v158_v60, %v158_v60  ;;  %v1199_v2 = vcombine.high %v1836_v0, %v1836_v0  ;;  %v1340_v3 = vld [vmem:[#allocation11 + $0x10] ss:$8 sps:$4 sm:$0xff]   ;;  %v1348_v4 = vld [vmem:[#allocation11 + $0x24] ss:$8 sps:$4 sm:$0xff]   ;;  %p1638_p1 = scmp.lt.s32.totalorder %s1119_s30, %s1119_s30 }
  0x92   :  { %577 = vmatpush1.bf16.msra.mxu0 %v1298_v11  ;;  %v1405_v5 = vld [vmem:[#allocation10 + $0xc0] ss:$8 sps:$4 sm:$0xff]   ;;  %v1409_v6 = vld [vmem:[#allocation10 + $0xd4] ss:$8 sps:$4 sm:$0xff]   ;;  %v1411_v9 = vld [vmem:[#allocation10 + $0xd0] ss:$8 sps:$4 sm:$0xff]  }
  0x93   :  { %578 = vmatprep.subr.bf16.mxu0 %v1299_v12  ;;  %367 = vmatpush1.bf16.msra.mxu1 %v1357_v32  ;;  %v1346_v7 = vld [vmem:[#allocation11 + $0x20] ss:$8 sps:$4 sm:$0xff]   ;;  %v1354_v8 = vld [vmem:[#allocation11 + $0x34] ss:$8 sps:$4 sm:$0xff]   ;;  %v1415_v10 = vld [vmem:[#allocation10 + $0xe4] ss:$8 sps:$4 sm:$0xff]  }
  0x94   :  { %368 = vmatprep.subr.bf16.mxu1 %v1361_v33  ;;  %390 = vmatprep.mubr.bf16.mxu1 %v1131_v63  ;;  %v1352_v11 = vld [vmem:[#allocation11 + $0x30] ss:$8 sps:$4 sm:$0xff]   ;;  %v1360_v12 = vld [vmem:[#allocation11 + $0x44] ss:$8 sps:$4 sm:$0xff]   ;;  %v1417_v13 = vld [vmem:[#allocation10 + $0xe0] ss:$8 sps:$4 sm:$0xff]   ;;  %v1198_v63 = vcombine.low %v1836_v0, %v1836_v0 }
  0x95   :  { %v1421_v14 = vld [vmem:[#allocation10 + $0xf4] ss:$8 sps:$4 sm:$0xff]   ;;  %v1358_v15 = vld [vmem:[#allocation11 + $0x40] ss:$8 sps:$4 sm:$0xff]   ;;  %v1423_v17 = vld [vmem:[#allocation10 + $0xf0] ss:$8 sps:$4 sm:$0xff]  }
  0x96   :  { %579 = vmatpush1.bf16.msra.mxu0 %v1301_v16  ;;  %v1366_v16 = vld [vmem:[#allocation11 + $0x54] ss:$8 sps:$4 sm:$0xff]   ;;  %v1364_v19 = vld [vmem:[#allocation11 + $0x50] ss:$8 sps:$4 sm:$0xff]   ;;  %v1372_v20 = vld [vmem:[#allocation11 + $0x64] ss:$8 sps:$4 sm:$0xff]  }
  0x97   :  { %580 = vmatprep.subr.bf16.mxu0 %v1302_v18  ;;  %369 = vmatpush1.bf16.msra.mxu1 %v1363_v36  ;;  %v1433_v18 = vld [vmem:[#allocation13 + $0x4] ss:$8 sps:$4 sm:$0xff]   ;;  %v1436_v23 = vld [vmem:[#allocation13 + $0x14] ss:$8 sps:$4 sm:$0xff]   ;;  %v1370_v24 = vld [vmem:[#allocation11 + $0x60] ss:$8 sps:$4 sm:$0xff]  }
  0x98   :  { %370 = vmatprep.subr.bf16.mxu1 %v1367_v37  ;;  %v1434_v26 = vld [vmem:[#allocation13 + $0x10] ss:$8 sps:$4 sm:$0xff]   ;;  %v1384_v29 = vld [vmem:[#allocation11 + $0x84] ss:$8 sps:$4 sm:$0xff]   ;;  %v1382_v32 = vld [vmem:[#allocation11 + $0x80] ss:$8 sps:$4 sm:$0xff]  }
  0x99   :  { %v1376_v28 = vld [vmem:[#allocation11 + $0x70] ss:$8 sps:$4 sm:$0xff]   ;;  %v1390_v33 = vld [vmem:[#allocation11 + $0x94] ss:$8 sps:$4 sm:$0xff]   ;;  %v1396_v37 = vld [vmem:[#allocation11 + $0xa4] ss:$8 sps:$4 sm:$0xff]  }
  0x9a   :  { %581 = vmatpush1.bf16.msra.mxu0 %v1304_v21  ;;  %v1130_v21 = vcombine.low %v158_v60, %v158_v60  ;;  %v1388_v36 = vld [vmem:[#allocation11 + $0x90] ss:$8 sps:$4 sm:$0xff]   ;;  %s1633_s0 = scalar_lea.vmem %s1119_s30, 256 }
  0x9b   :  { %582 = vmatprep.subr.bf16.mxu0 %v1305_v22  ;;  %371 = vmatpush1.bf16.msra.mxu1 %v1369_v40  ;;  %v1431_v22 = vld [vmem:[#allocation13] ss:$8 sps:$4 sm:$0xff]   ;;  %v1426_v60 = vld [vmem:[#allocation11 + $0xf0] ss:$8 sps:$4 sm:$0xff]   ;;  %p1634_p0 = scmp.ne.s32.totalorder %s1119_s30, %s1633_s0  ;;  %p1639_p2 = scmp.lt.s32.totalorder %s1633_s0, %s1633_s0 }
  0x9c   :  { %372 = vmatprep.subr.bf16.mxu1 %v1373_v41  ;;  %v1394_v40 = vld [vmem:[#allocation11 + $0xa0] ss:$8 sps:$4 sm:$0xff]   ;;  %v1402_v41 = vld [vmem:[#allocation11 + $0xb4] ss:$8 sps:$4 sm:$0xff]   ;;  %v1476_v0 = vld [vmem:[#allocation13 + $0xf0] ss:$8 sps:$4 sm:$0xff]  }
  0x9d   :  { %p1640_p3 = por %p1639_p2, %p1638_p1 }
  0x9e   :  { %583 = vmatpush1.bf16.msra.mxu0 %v1307_v25  ;;  %v1378_v25 = vld [vmem:[#allocation11 + $0x74] ss:$8 sps:$4 sm:$0xff]  }
  0x9f   :  { %584 = vmatprep.subr.bf16.mxu0 %v1308_v27  ;;  %373 = vmatpush1.bf16.msra.mxu1 %v1375_v44  ;;  %v1439_v27 = vld [vmem:[#allocation13 + $0x24] ss:$8 sps:$4 sm:$0xff]   ;;  %v1400_v44 = vld [vmem:[#allocation11 + $0xb0] ss:$8 sps:$4 sm:$0xff]   ;;  %p1641_p4 = pnand %p1640_p3, %p1634_p0 }
  0xa0   :  { %374 = vmatprep.subr.bf16.mxu1 %v1379_v45  ;;  %v1408_v45 = vld [vmem:[#allocation11 + $0xc4] ss:$8 sps:$4 sm:$0xff]  }
  0xa2   :  { %585 = vmatpush1.bf16.msra.mxu0 %v1310_v30  ;;  %v1437_v30 = vld [vmem:[#allocation13 + $0x20] ss:$8 sps:$4 sm:$0xff]  }
  0xa3   :  { %586 = vmatprep.subr.bf16.mxu0 %v1311_v31  ;;  %375 = vmatpush1.bf16.msra.mxu1 %v1381_v48  ;;  %v1442_v31 = vld [vmem:[#allocation13 + $0x34] ss:$8 sps:$4 sm:$0xff]   ;;  %v1406_v48 = vld [vmem:[#allocation11 + $0xc0] ss:$8 sps:$4 sm:$0xff]  }
  0xa4   :  { %376 = vmatprep.subr.bf16.mxu1 %v1385_v49  ;;  %v1414_v49 = vld [vmem:[#allocation11 + $0xd4] ss:$8 sps:$4 sm:$0xff]  }
  0xa6   :  { %587 = vmatpush1.bf16.msra.mxu0 %v1313_v34  ;;  %v1440_v34 = vld [vmem:[#allocation13 + $0x30] ss:$8 sps:$4 sm:$0xff]  }
  0xa7   :  { %588 = vmatprep.subr.bf16.mxu0 %v1314_v35  ;;  %377 = vmatpush1.bf16.msra.mxu1 %v1387_v52  ;;  %v1445_v35 = vld [vmem:[#allocation13 + $0x44] ss:$8 sps:$4 sm:$0xff]   ;;  %v1412_v52 = vld [vmem:[#allocation11 + $0xd0] ss:$8 sps:$4 sm:$0xff]  }
  0xa8   :  { %378 = vmatprep.subr.bf16.mxu1 %v1391_v53  ;;  %v1420_v53 = vld [vmem:[#allocation11 + $0xe4] ss:$8 sps:$4 sm:$0xff]  }
  0xaa   :  { %589 = vmatpush1.bf16.msra.mxu0 %v1316_v38  ;;  %v1443_v38 = vld [vmem:[#allocation13 + $0x40] ss:$8 sps:$4 sm:$0xff]  }
  0xab   :  { %590 = vmatprep.subr.bf16.mxu0 %v1317_v39  ;;  %379 = vmatpush1.bf16.msra.mxu1 %v1393_v56  ;;  %v1448_v39 = vld [vmem:[#allocation13 + $0x54] ss:$8 sps:$4 sm:$0xff]   ;;  %v1418_v56 = vld [vmem:[#allocation11 + $0xe0] ss:$8 sps:$4 sm:$0xff]  }
  0xac   :  { %380 = vmatprep.subr.bf16.mxu1 %v1397_v57  ;;  %v1428_v57 = vld [vmem:[#allocation11 + $0xf4] ss:$8 sps:$4 sm:$0xff]  }
  0xae   :  { %591 = vmatpush1.bf16.msra.mxu0 %v1319_v42  ;;  %v1446_v42 = vld [vmem:[#allocation13 + $0x50] ss:$8 sps:$4 sm:$0xff]  }
  0xaf   :  { %592 = vmatprep.subr.bf16.mxu0 %v1320_v43  ;;  %381 = vmatpush1.bf16.msra.mxu1 %v1399_v62  ;;  %v1451_v43 = vld [vmem:[#allocation13 + $0x64] ss:$8 sps:$4 sm:$0xff]   ;;  %v1466_v62 = vld [vmem:[#allocation13 + $0xb4] ss:$8 sps:$4 sm:$0xff]  }
  0xb0   :  { %382 = vmatprep.subr.bf16.mxu1 %v1403_v1  ;;  %v1464_v1 = vld [vmem:[#allocation13 + $0xb0] ss:$8 sps:$4 sm:$0xff]  }
  0xb2   :  { %593 = vmatpush1.bf16.msra.mxu0 %v1322_v46  ;;  %v1449_v46 = vld [vmem:[#allocation13 + $0x60] ss:$8 sps:$4 sm:$0xff]  }
  0xb3   :  { %594 = vmatprep.subr.bf16.mxu0 %v1323_v47  ;;  %383 = vmatpush1.bf16.msra.mxu1 %v1405_v5  ;;  %v1454_v47 = vld [vmem:[#allocation13 + $0x74] ss:$8 sps:$4 sm:$0xff]   ;;  %v1470_v5 = vld [vmem:[#allocation13 + $0xd0] ss:$8 sps:$4 sm:$0xff]  }
  0xb4   :  { %384 = vmatprep.subr.bf16.mxu1 %v1409_v6  ;;  %v1473_v6 = vld [vmem:[#allocation13 + $0xe0] ss:$8 sps:$4 sm:$0xff]  }
  0xb6   :  { %595 = vmatpush1.bf16.msra.mxu0 %v1325_v50  ;;  %v1452_v50 = vld [vmem:[#allocation13 + $0x70] ss:$8 sps:$4 sm:$0xff]  }
  0xb7   :  { %596 = vmatprep.subr.bf16.mxu0 %v1326_v51  ;;  %385 = vmatpush1.bf16.msra.mxu1 %v1411_v9  ;;  %v1457_v51 = vld [vmem:[#allocation13 + $0x84] ss:$8 sps:$4 sm:$0xff]  }
  0xb8   :  { %386 = vmatprep.subr.bf16.mxu1 %v1415_v10 }
  0xba   :  { %597 = vmatpush1.bf16.msra.mxu0 %v1330_v54  ;;  %v1455_v54 = vld [vmem:[#allocation13 + $0x80] ss:$8 sps:$4 sm:$0xff]  }
  0xbb   :  { %807 = vmatprep.subr.bf16.mxu0 %v1336_v55  ;;  %387 = vmatpush1.bf16.msra.mxu1 %v1417_v13  ;;  %v1460_v55 = vld [vmem:[#allocation13 + $0x94] ss:$8 sps:$4 sm:$0xff]  }
  0xbc   :  { %388 = vmatprep.subr.bf16.mxu1 %v1421_v14 }
  0xbd   :  { %599 = vmatmul.mubr.bf16.vlgmr.msra.gmra.mrb[0].mxu0 %v1164_v58  ;;  %v1458_v58 = vld [vmem:[#allocation13 + $0x90] ss:$8 sps:$4 sm:$0xff]  }
  0xbe   :  { %808 = vmatpush1.bf16.msra.mxu0 %v1334_v59  ;;  %839 = vmatprep.mubr.bf16.mxu0 %v1199_v2  ;;  %v1463_v59 = vld [vmem:[#allocation13 + $0xa4] ss:$8 sps:$4 sm:$0xff]  }
  0xbf   :  { %809 = vmatprep.subr.bf16.mxu0 %v1342_v61  ;;  %389 = vmatpush1.bf16.msra.mxu1 %v1423_v17  ;;  %v1461_v61 = vld [vmem:[#allocation13 + $0xa0] ss:$8 sps:$4 sm:$0xff]   ;;  %v1469_v2 = vld [vmem:[#allocation13 + $0xc4] ss:$8 sps:$4 sm:$0xff]  }
  0xc0   :  { %1046 = vmatprep.subr.bf16.mxu1 %v1433_v18 }
  0xc2   :  { %810 = vmatpush1.bf16.msra.mxu0 %v1340_v3  ;;  %391 = vmatmul.mubr.bf16.vlgmr.msra.gmra.mrb[0].mxu1 %v1130_v21  ;;  %v1467_v3 = vld [vmem:[#allocation13 + $0xc0] ss:$8 sps:$4 sm:$0xff]   ;;  %v1098_v21 = vlaneseq }
  0xc3   :  { %811 = vmatprep.subr.bf16.mxu0 %v1348_v4  ;;  %1047 = vmatpush1.bf16.msra.mxu1 %v1431_v22  ;;  %v1472_v4 = vld [vmem:[#allocation13 + $0xd4] ss:$8 sps:$4 sm:$0xff]  }
  0xc4   :  { %1048 = vmatprep.subr.bf16.mxu1 %v1436_v23  ;;  %v1099_v22 = vshrl.u32 %v1098_v21, 7 }
  0xc6   :  { %812 = vmatpush1.bf16.msra.mxu0 %v1346_v7  ;;  %v1475_v7 = vld [vmem:[#allocation13 + $0xe4] ss:$8 sps:$4 sm:$0xff]   ;;  %v1100_v23 = vsub.s32 0, %v1099_v22 }
  0xc7   :  { %813 = vmatprep.subr.bf16.mxu0 %v1354_v8  ;;  %1049 = vmatpush1.bf16.msra.mxu1 %v1434_v26  ;;  %v1478_v8 = vld [vmem:[#allocation13 + $0xf4] ss:$8 sps:$4 sm:$0xff]  }
  0xc8   :  { %1050 = vmatprep.subr.bf16.mxu1 %v1439_v27 }
  0xca   :  { %814 = vmatpush1.bf16.msra.mxu0 %v1352_v11 }
  0xcb   :  { %815 = vmatprep.subr.bf16.mxu0 %v1360_v12  ;;  %1051 = vmatpush1.bf16.msra.mxu1 %v1437_v30 }
  0xcc   :  { %1052 = vmatprep.subr.bf16.mxu1 %v1442_v31 }
  0xce   :  { %816 = vmatpush1.bf16.msra.mxu0 %v1358_v15 }
  0xcf   :  { %817 = vmatprep.subr.bf16.mxu0 %v1366_v16  ;;  %1053 = vmatpush1.bf16.msra.mxu1 %v1440_v34 }
  0xd0   :  { %1054 = vmatprep.subr.bf16.mxu1 %v1445_v35 }
  0xd2   :  { %818 = vmatpush1.bf16.msra.mxu0 %v1364_v19 }
  0xd3   :  { %819 = vmatprep.subr.bf16.mxu0 %v1372_v20  ;;  %1055 = vmatpush1.bf16.msra.mxu1 %v1443_v38 }
  0xd4   :  { %1056 = vmatprep.subr.bf16.mxu1 %v1448_v39 }
  0xd6   :  { %820 = vmatpush1.bf16.msra.mxu0 %v1370_v24  ;;  %v1096_v24 = vld [vmem:[%s1864_s7] sm:$0x3] }
  0xd7   :  { %821 = vmatprep.subr.bf16.mxu0 %v1378_v25  ;;  %1057 = vmatpush1.bf16.msra.mxu1 %v1446_v42  ;;  %v1104_v25 = vsub.s32 1, %v1099_v22  ;;  %v1101_v26 = vrot.slane %v1096_v24, %v1100_v23 }
  0xd8   :  { %1058 = vmatprep.subr.bf16.mxu1 %v1451_v43 }
  0xda   :  { %822 = vmatpush1.bf16.msra.mxu0 %v1376_v28  ;;  %v1105_v28 = vrot.slane %v1096_v24, %v1104_v25 }
  0xdb   :  { %823 = vmatprep.subr.bf16.mxu0 %v1384_v29  ;;  %1059 = vmatpush1.bf16.msra.mxu1 %v1449_v46 }
  0xdc   :  { %1060 = vmatprep.subr.bf16.mxu1 %v1454_v47 }
  0xde   :  { %824 = vmatpush1.bf16.msra.mxu0 %v1382_v32 }
  0xdf   :  { %825 = vmatprep.subr.bf16.mxu0 %v1390_v33  ;;  %1061 = vmatpush1.bf16.msra.mxu1 %v1452_v50 }
  0xe0   :  { %1062 = vmatprep.subr.bf16.mxu1 %v1457_v51 }
  0xe2   :  { %826 = vmatpush1.bf16.msra.mxu0 %v1388_v36 }
  0xe3   :  { %827 = vmatprep.subr.bf16.mxu0 %v1396_v37  ;;  %1063 = vmatpush1.bf16.msra.mxu1 %v1455_v54 }
  0xe4   :  { %1064 = vmatprep.subr.bf16.mxu1 %v1460_v55 }
  0xe6   :  { %828 = vmatpush1.bf16.msra.mxu0 %v1394_v40 }
  0xe7   :  { %829 = vmatprep.subr.bf16.mxu0 %v1402_v41  ;;  %1065 = vmatpush1.bf16.msra.mxu1 %v1458_v58 }
  0xe8   :  { %1066 = vmatprep.subr.bf16.mxu1 %v1463_v59 }
  0xea   :  { %830 = vmatpush1.bf16.msra.mxu0 %v1400_v44 }
  0xeb   :  { %831 = vmatprep.subr.bf16.mxu0 %v1408_v45  ;;  %1067 = vmatpush1.bf16.msra.mxu1 %v1461_v61 }
  0xec   :  { %1068 = vmatprep.subr.bf16.mxu1 %v1466_v62 }
  0xee   :  { %832 = vmatpush1.bf16.msra.mxu0 %v1406_v48 }
  0xef   :  { %833 = vmatprep.subr.bf16.mxu0 %v1414_v49  ;;  %1069 = vmatpush1.bf16.msra.mxu1 %v1464_v1 }
  0xf0   :  { %1070 = vmatprep.subr.bf16.mxu1 %v1469_v2 }
  0xf2   :  { %834 = vmatpush1.bf16.msra.mxu0 %v1412_v52 }
  0xf3   :  { %835 = vmatprep.subr.bf16.mxu0 %v1420_v53  ;;  %1071 = vmatpush1.bf16.msra.mxu1 %v1467_v3 }
  0xf4   :  { %1072 = vmatprep.subr.bf16.mxu1 %v1472_v4 }
  0xf6   :  { %836 = vmatpush1.bf16.msra.mxu0 %v1418_v56 }
  0xf7   :  { %837 = vmatprep.subr.bf16.mxu0 %v1428_v57  ;;  %1073 = vmatpush1.bf16.msra.mxu1 %v1470_v5 }
  0xf8   :  { %1074 = vmatprep.subr.bf16.mxu1 %v1475_v7 }
  0xfa   :  { %838 = vmatpush1.bf16.msra.mxu0 %v1426_v60 }
  0xfb   :  { %1075 = vmatpush1.bf16.msra.mxu1 %v1473_v6 }
  0xfc   :  { %1076 = vmatprep.subr.bf16.mxu1 %v1478_v8 }
  0xfd   :  { %840 = vmatmul.mubr.bf16.vlgmr.msra.gmra.mrb[0].mxu0 %v1198_v63 }
  0xff   :  { %1077 = vmatpush1.bf16.msra.mxu1 %v1476_v0 }
 0x195   :  { %v392_v9 = vpop.f32.mrb[0].mxu1 }
 0x196   :  { %v394_v10 = vpop.f32.mrb[1].mxu1 }
 0x197   :  { %v396_v11 = vpop.f32.mrb[2].mxu1 }
 0x198   :  { %v397_v12 = vpop.f32.mrb[3].mxu1 }
 0x1d0   :  { %v841_v13 = vpop.f32.mrb[0].mxu0 }
 0x1d1   :  { %v1264_v14 = vadd.f32 %v841_v13, %v392_v9  ;;  %v843_v15 = vpop.f32.mrb[1].mxu0 }
 0x1d2   :  { %v1265_v16 = vadd.f32 %v843_v15, %v394_v10  ;;  %v845_v17 = vpop.f32.mrb[2].mxu0 }
 0x1d3   :  { %v846_v18 = vpop.f32.mrb[3].mxu0  ;;  %v852_v20 = vpack.c.bf16 %v1264_v14, %v1264_v14 }
 0x1d4   :  { %v853_v19 = vpack.c.bf16 %v1265_v16, %v1265_v16 }
 0x1d6   :  { %1078 = vmatprep.mubr.bf16.mxu1 %v853_v19 }
 0x1d7   :  { %1079 = vmatmul.mubr.bf16.vlgmr.msra.gmra.mrb[4].mxu1 %v852_v20 }
 0x2aa   :  { %v1080_v27 = vpop.f32.mrb[4].mxu1 }
 0x2ab   :  { %v1082_v29 = vpop.f32.mrb[5].mxu1  ;;  %v1108_v32 = vadd.f32 %v1101_v26, %v1080_v27 }
 0x2ac   :  { %v1084_v30 = vpop.f32.mrb[6].mxu1  ;;  %v1109_v33 = vadd.f32 %v1105_v28, %v1082_v29 }
 0x2ad   :  { %v1085_v31 = vpop.f32.mrb[7].mxu1  ;;  %1110 = vst [vmem:[#allocation14] sm:$0xff] %v1108_v32 }
 0x2ae   :  { %1111 = vst [vmem:[#allocation14 + $0x8] sm:$0xff] %v1109_v33 }
 0x2af   :  { %1644 = shalt.err (!%p1641_p4)
}
 0x2b0   :  { %s1645_s20 = scalar_lea.hbm %s1865_s8, 256 }
 0x2b1   :  { %p1646_p5 = scmp.ne.s32.totalorder %s1865_s8, %s1645_s20  ;;  %p1649_p6 = scmp.lt.u32.totalorder %s1645_s20, %s1865_s8 }
 0x2b3   :  { %p1651_p7 = pnand %p1649_p6, %p1646_p5 }
 0x2b5   :  { %1654 = shalt.err (!%p1651_p7)
}
 0x2b6   :  { %1121 = dma.vmem_to_hbm [thread:$0]  %s1119_s30, 256, %s1865_s8, [#allocation4]  }
 0x2b7   :  { %1663 = dma.done.wait [#allocation4], 256  }
 0x2b8   :  { %1664 = vsyncadd [#allocation4], 4294967040 }
 0x2b9   :  { %1125 = vsyncpa [#allocation3], 1 }
 0x2ba   :  { %1126 = vsyncpa [#allocation6], 1 }
 0x2bb   :  { %1127 = vsyncpa [#allocation9], 1 }
 0x2bc   :  { %1128 = vsyncpa [#allocation12], 1 }
 0x2bd   :  { %1129 = vsyncpa [#allocation4], 1 }

</bundles_post_ra>
